<compile_context>
chip_gen: v7x
topology: tpu7x:2x2x1
jax: 0.10.0
libtpu: 0.0.40
codegen_flags: <defaults>
</compile_context>

<pallas_src>
import math

import jax
import jax.numpy as jnp
from jax.experimental import pallas as pl
from jax.experimental.pallas import tpu as pltpu


# ----------------------------------------------------------------------------
# Kernel
# ----------------------------------------------------------------------------
def qnetwork_kernel(xu_ref, p_ref, out_ref):
    """xu_ref: (bb, IN); p_ref: (IN + 2P + 3, P) packed params; out_ref: (bb, 2).

    Param slab layout (P = 2 * hidden_dim):
      rows [0, IN)          : W1 = [w1 | w4]                (IN, P)
      rows [IN, IN+P)       : W2 = blockdiag(w2, w5)        (P, P)
      rows [IN+P, IN+2P)    : W3 = [w3|0 ; 0|w6] zero-padded to (P, P)
      rows [IN+2P, IN+2P+3) : bias rows b1, b2, b3 (each (1, P))
    """
    IN = xu_ref.shape[1]
    P = p_ref.shape[1]
    base = IN + 2 * P

    xu = xu_ref[...]
    b = p_ref[base:base + 3, :]                       # (3, P) bias rows

    # layer 1 (both heads, fused along the lane dim)
    h = jnp.dot(xu, p_ref[0:IN, :], preferred_element_type=jnp.float32) + b[0:1, :]
    h = jnp.maximum(h, 0.0)

    # layer 2 (block-diagonal -> heads stay independent)
    h = jnp.dot(h, p_ref[IN:IN + P, :], preferred_element_type=jnp.float32) + b[1:2, :]
    h = jnp.maximum(h, 0.0)

    # layer 3 (block-diagonal, padded to P cols; only cols 0/1 are non-zero)
    out = jnp.dot(h, p_ref[IN + P:IN + 2 * P, :],
                  preferred_element_type=jnp.float32) + b[2:3, :]

    out_ref[...] = out[:, 0:2].astype(out_ref.dtype)  # (bb, 2): col0=Q1, col1=Q2


# ----------------------------------------------------------------------------
# Wrapper
# ----------------------------------------------------------------------------
def qnetwork_forward(state, action, param_slab, *, block_b=256):
    """state: (B, num_inputs), action: (B, num_actions) -> (q1, q2), each (B, 1)."""
    B = state.shape[0]
    # fuse torch.cat([state, action], 1) in the wrapper -> one lane-dense input
    xu = jnp.concatenate([state, action], axis=1).astype(jnp.float32)
    in_dim = xu.shape[1]
    rows, P = param_slab.shape

    # batch tiling: single step for small batches; 8-aligned tiles (<=256 rows)
    # for large batches so the grid can be sharded across cores.
    bb = min(block_b, B)
    bb = max(8, ((bb + 7) // 8) * 8)
    Bp = pl.cdiv(B, bb) * bb
    if Bp != B:
        xu = jnp.pad(xu, ((0, Bp - B), (0, 0)))
    grid = (Bp // bb,)

    out = pl.pallas_call(
        qnetwork_kernel,
        out_shape=jax.ShapeDtypeStruct((Bp, 2), jnp.float32),
        grid=grid,
        in_specs=[
            pl.BlockSpec((bb, in_dim), lambda i: (i, 0)),   # batch-tiled activations
            pl.BlockSpec((rows, P), lambda i: (0, 0)),      # params resident across steps
        ],
        out_specs=pl.BlockSpec((bb, 2), lambda i: (i, 0)),
        compiler_params=pltpu.CompilerParams(
            dimension_semantics=("parallel",)),
    )(xu, param_slab)

    q = out[:B]
    return q[:, 0:1], q[:, 1:2]


# ----------------------------------------------------------------------------
# Parameters (matches torch: Linear + xavier_uniform_(gain=1), bias = 0)
# ----------------------------------------------------------------------------
def xavier_uniform(key, fan_in, fan_out, gain=1.0):
    bound = gain * math.sqrt(6.0 / (fan_in + fan_out))
    return jax.random.uniform(key, (fan_in, fan_out), jnp.float32, -bound, bound)


def init_qnetwork_params(key, num_inputs, num_actions, hidden_dim):
    """Natural (unpacked) params, stored as (in, out) so y = x @ W + b."""
    ks = jax.random.split(key, 6)
    d, h = num_inputs + num_actions, hidden_dim
    z = lambda *s: jnp.zeros(s, jnp.float32)
    return {
        "w1": xavier_uniform(ks[0], d, h), "b1": z(1, h),
        "w2": xavier_uniform(ks[1], h, h), "b2": z(1, h),
        "w3": xavier_uniform(ks[2], h, 1), "b3": z(1, 1),
        "w4": xavier_uniform(ks[3], d, h), "b4": z(1, h),
        "w5": xavier_uniform(ks[4], h, h), "b5": z(1, h),
        "w6": xavier_uniform(ks[5], h, 1), "b6": z(1, 1),
    }


def pack_params(p, num_inputs, num_actions, hidden_dim):
    """Pack the 12 arrays into one (d + 4h + 3, 2h) f32 slab (see kernel docstring)."""
    d, h = num_inputs + num_actions, hidden_dim
    P = 2 * h
    W1 = jnp.concatenate([p["w1"], p["w4"]], axis=1)                         # (d, P)
    W2 = jnp.zeros((P, P), jnp.float32)
    W2 = W2.at[:h, :h].set(p["w2"]).at[h:, h:].set(p["w5"])                  # (P, P)
    W3 = jnp.zeros((P, P), jnp.float32)
    W3 = W3.at[:h, 0:1].set(p["w3"]).at[h:, 1:2].set(p["w6"])                # (P, P)
    b1 = jnp.concatenate([p["b1"], p["b4"]], axis=1)                         # (1, P)
    b2 = jnp.concatenate([p["b2"], p["b5"]], axis=1)                         # (1, P)
    b3 = jnp.zeros((1, P), jnp.float32)
    b3 = b3.at[0, 0].set(p["b3"][0, 0]).at[0, 1].set(p["b6"][0, 0])          # (1, P)
    return jnp.concatenate([W1, W2, W3, b1, b2, b3], axis=0)                 # (d+4h+3, P)


# ----------------------------------------------------------------------------
# Pure-JAX reference (mirrors the PyTorch forward, uses the UNPACKED params so
# the packing / head-fusion in the kernel is actually validated)
# ----------------------------------------------------------------------------
def qnetwork_reference(state, action, p):
    xu = jnp.concatenate([state, action], axis=1)
    x1 = jax.nn.relu(xu @ p["w1"] + p["b1"])
    x1 = jax.nn.relu(x1 @ p["w2"] + p["b2"])
    x1 = x1 @ p["w3"] + p["b3"]
    x2 = jax.nn.relu(xu @ p["w4"] + p["b4"])
    x2 = jax.nn.relu(x2 @ p["w5"] + p["b5"])
    x2 = x2 @ p["w6"] + p["b6"]
    return x1, x2


if __name__ == "__main__":
    num_inputs, num_actions, hidden_dim = 24, 8, 32
    batch = 8

    key = jax.random.PRNGKey(0)
    k_params, k_state, k_action = jax.random.split(key, 3)

    nat_params = init_qnetwork_params(k_params, num_inputs, num_actions, hidden_dim)
    param_slab = pack_params(nat_params, num_inputs, num_actions, hidden_dim)

    state = jax.random.normal(k_state, (batch, num_inputs), jnp.float32)
    action = jax.random.normal(k_action, (batch, num_actions), jnp.float32)

    q1, q2 = qnetwork_forward(state, action, param_slab)
    q1 = jax.block_until_ready(q1)
    q2 = jax.block_until_ready(q2)

    r1, r2 = qnetwork_reference(state, action, nat_params)
    assert q1.shape == (batch, 1) and q2.shape == (batch, 1)
    assert jnp.allclose(q1, r1, atol=1e-4), "Q1 mismatch vs reference"
    assert jnp.allclose(q2, r2, atol=1e-4), "Q2 mismatch vs reference"

    print("KERNEL_OK")
</pallas_src>

<mosaic_0001>
module attributes {stable_mosaic.version = 11 : i64} {
  func.func @qnetwork_kernel(%arg0: i32, %arg1: memref<8x32xf32, #tpu.memory_space<vmem>>, %arg2: memref<163x64xf32, #tpu.memory_space<vmem>>, %arg3: memref<8x2xf32, #tpu.memory_space<vmem>>) attributes {dimension_semantics = [#tpu.dimension_semantics<parallel>], iteration_bounds = array<i64: 1>, scalar_prefetch = 0 : i64, scratch_operands = 0 : i64, tpu.core_type = #tpu.core_type<tc>, window_params = [{transform_indices = @transform_0, window_bounds = array<i64: 8, 32>}, {pipeline_mode = #tpu.pipeline_mode<synchronous>, transform_indices = @transform_1, window_bounds = array<i64: 163, 64>}, {transform_indices = @transform_2, window_bounds = array<i64: 8, 2>}]} {
    %c0 = arith.constant 0 : index
    %c0_0 = arith.constant 0 : index
    %0 = vector.load %arg1[%c0, %c0_0] : memref<8x32xf32, #tpu.memory_space<vmem>>, vector<8x32xf32>
    %c160 = arith.constant 160 : index
    %c0_1 = arith.constant 0 : index
    %1 = vector.load %arg2[%c160, %c0_1] : memref<163x64xf32, #tpu.memory_space<vmem>>, vector<3x64xf32>
    %c0_2 = arith.constant 0 : index
    %c0_3 = arith.constant 0 : index
    %2 = vector.load %arg2[%c0_2, %c0_3] : memref<163x64xf32, #tpu.memory_space<vmem>>, vector<32x64xf32>
    %cst = arith.constant dense<0.000000e+00> : vector<8x64xf32>
    %3 = tpu.matmul %0, %2, %cst {dimension_numbers = #tpu.dot_dimension_numbers<[1], [0], [0], [1], [0, 0, 1, 1], [], []>} : vector<8x32xf32>, vector<32x64xf32>, vector<8x64xf32> -> vector<8x64xf32>
    %4 = vector.extract_strided_slice %1 {offsets = [0, 0], sizes = [1, 64], strides = [1, 1]} : vector<3x64xf32> to vector<1x64xf32>
    %5 = vector.broadcast %4 : vector<1x64xf32> to vector<8x64xf32>
    %6 = arith.addf %3, %5 : vector<8x64xf32>
    %cst_4 = arith.constant 0.000000e+00 : f32
    %7 = vector.broadcast %cst_4 : f32 to vector<8x64xf32>
    %8 = arith.maximumf %6, %7 : vector<8x64xf32>
    %c32 = arith.constant 32 : index
    %c0_5 = arith.constant 0 : index
    %9 = vector.load %arg2[%c32, %c0_5] : memref<163x64xf32, #tpu.memory_space<vmem>>, vector<64x64xf32>
    %cst_6 = arith.constant dense<0.000000e+00> : vector<8x64xf32>
    %10 = tpu.matmul %8, %9, %cst_6 {dimension_numbers = #tpu.dot_dimension_numbers<[1], [0], [0], [1], [0, 0, 1, 1], [], []>} : vector<8x64xf32>, vector<64x64xf32>, vector<8x64xf32> -> vector<8x64xf32>
    %11 = vector.extract_strided_slice %1 {offsets = [1, 0], sizes = [1, 64], strides = [1, 1]} : vector<3x64xf32> to vector<1x64xf32>
    %12 = vector.broadcast %11 : vector<1x64xf32> to vector<8x64xf32>
    %13 = arith.addf %10, %12 : vector<8x64xf32>
    %cst_7 = arith.constant 0.000000e+00 : f32
    %14 = vector.broadcast %cst_7 : f32 to vector<8x64xf32>
    %15 = arith.maximumf %13, %14 : vector<8x64xf32>
    %c96 = arith.constant 96 : index
    %c0_8 = arith.constant 0 : index
    %16 = vector.load %arg2[%c96, %c0_8] : memref<163x64xf32, #tpu.memory_space<vmem>>, vector<64x64xf32>
    %cst_9 = arith.constant dense<0.000000e+00> : vector<8x64xf32>
    %17 = tpu.matmul %15, %16, %cst_9 {dimension_numbers = #tpu.dot_dimension_numbers<[1], [0], [0], [1], [0, 0, 1, 1], [], []>} : vector<8x64xf32>, vector<64x64xf32>, vector<8x64xf32> -> vector<8x64xf32>
    %18 = vector.extract_strided_slice %1 {offsets = [2, 0], sizes = [1, 64], strides = [1, 1]} : vector<3x64xf32> to vector<1x64xf32>
    %19 = vector.broadcast %18 : vector<1x64xf32> to vector<8x64xf32>
    %20 = arith.addf %17, %19 : vector<8x64xf32>
    %21 = vector.extract_strided_slice %20 {offsets = [0, 0], sizes = [8, 2], strides = [1, 1]} : vector<8x64xf32> to vector<8x2xf32>
    %c0_10 = arith.constant 0 : index
    %c0_11 = arith.constant 0 : index
    %22 = vector.load %arg3[%c0_10, %c0_11] : memref<8x2xf32, #tpu.memory_space<vmem>>, vector<8x2xf32>
    tpu.vector_store %arg3[%c0_10, %c0_11], %21 {strides = array<i32>} : memref<8x2xf32, #tpu.memory_space<vmem>>, vector<8x2xf32>,
    return
  }
  func.func @transform_0(%arg0: i32) -> (i32, i32) {
    %c0_i32 = arith.constant 0 : i32
    %c0_i32_0 = arith.constant 0 : i32
    return %arg0, %c0_i32 : i32, i32
  }
  func.func @transform_1(%arg0: i32) -> (i32, i32) {
    %c0_i32 = arith.constant 0 : i32
    %c0_i32_0 = arith.constant 0 : i32
    %c0_i32_1 = arith.constant 0 : i32
    return %c0_i32, %c0_i32_0 : i32, i32
  }
  func.func @transform_2(%arg0: i32) -> (i32, i32) {
    %c0_i32 = arith.constant 0 : i32
    %c0_i32_0 = arith.constant 0 : i32
    return %arg0, %c0_i32 : i32, i32
  }
}

</mosaic_0001>

<bundles_post_ra>
// kernel: tpu_custom_call.1
= control target key start
LH: loop header
LB: loop body
LE: loop exit
PB: predicated region body
PF: predicated region fallthrough
CT: control target
= control target key end

     0   :  { %v382_v0 = vmov 0.0|0.0   ;;  %vm383_vm0 = vmmov 0   ;;  %v384_v4 = vmov 0.0   ;;  %vm21_vm1 = vcmask 261120   ;;  %s472_s1 = inlined_call_operand.vmem [shape: f32[163,64], index: 1, kind: input, shape index: {}]   ;;  %s473_s0 = inlined_call_operand.vmem [shape: f32[8,32], index: 0, kind: input, shape index: {}]   ;;  %s474_s2 = inlined_call_operand.vmem [shape: f32[8,2], index: 2, kind: output, shape index: {}]  }
   0x1   :  { %349 = vmatprep.subr.bf16.mxu0 %v382_v0  ;;  %v13_v1 = vld [vmem:[%s472_s1] sm:$0xff]  ;;  %v14_v2 = vld [vmem:[%s472_s1 + $0x8] sm:$0xff]  ;;  %v15_v3 = vld [vmem:[%s472_s1 + $0x10] sm:$0xff]  ;;  %308 = vmatprep.mubr.msk.f32.mxu0 %vm383_vm0, %v384_v4  ;;  %v17_v30 = vlaneseq  ;;  %vm108_vm2 = vcmask 523264   ;;  %vm268_vm3 = vcmask 15360  }
   0x2   :  { %v350_v5 = vpack.c.bf16 %v14_v2, %v13_v1  ;;  %v16_v6 = vld [vmem:[%s472_s1 + $0x18] sm:$0xff]  ;;  %355 = vmatprep.subr.bf16.mxu1 %v382_v0  ;;  %v96_v7 = vld [vmem:[%s472_s1 + $0x20] sm:$0xff]  ;;  %327 = vmatprep.mubr.msk.f32.mxu1 %vm383_vm0, %v384_v4  ;;  %v97_v8 = vld [vmem:[%s472_s1 + $0x28] sm:$0xff] }
   0x3   :  { %v98_v9 = vld [vmem:[%s472_s1 + $0x30] sm:$0xff]  ;;  %v99_v10 = vld [vmem:[%s472_s1 + $0x38] sm:$0xff]  ;;  %v353_v11 = vpack.c.bf16 %v16_v6, %v15_v3  ;;  %v356_v12 = vpack.c.bf16 %v97_v8, %v96_v7  ;;  %v100_v14 = vld [vmem:[%s472_s1 + $0x40] sm:$0xff]  ;;  %v18_v31 = vshrl.u32 %v17_v30, 7 }
   0x4   :  { %351 = vmatpush3.bf16.msra.mxu0 %v350_v5  ;;  %v359_v13 = vpack.c.bf16 %v99_v10, %v98_v9  ;;  %v101_v15 = vld [vmem:[%s472_s1 + $0x48] sm:$0xff]  ;;  %v11_v16 = vld [vmem:[%s473_s0] sm:$0xff]  ;;  %v102_v18 = vld [vmem:[%s472_s1 + $0x50] sm:$0xff] }
   0x5   :  { %352 = vmatprep.subr.bf16.mxu0 %v382_v0  ;;  %357 = vmatpush3.bf16.msra.mxu1 %v356_v12  ;;  %v362_v17 = vpack.c.bf16 %v101_v15, %v100_v14  ;;  %v103_v19 = vld [vmem:[%s472_s1 + $0x58] sm:$0xff]  ;;  %v183_v21 = vld [vmem:[%s472_s1 + $0x60] sm:$0xff]  ;;  %v184_v22 = vld [vmem:[%s472_s1 + $0x68] sm:$0xff]  ;;  %v19_v32 = vsub.s32 0, %v18_v31  ;;  %v106_v42 = vsub.s32 1, %v18_v31  ;;  %v193_v48 = vsub.s32 2, %v18_v31 }
   0x6   :  { %358 = vmatprep.subr.bf16.mxu1 %v382_v0  ;;  %v365_v20 = vpack.c.bf16 %v103_v19, %v102_v18  ;;  %v185_v23 = vld [vmem:[%s472_s1 + $0x70] sm:$0xff]  ;;  %v368_v24 = vpack.c.bf16 %v184_v22, %v183_v21  ;;  %v186_v25 = vld [vmem:[%s472_s1 + $0x78] sm:$0xff]  ;;  %v187_v27 = vld [vmem:[%s472_s1 + $0x80] sm:$0xff] }
   0x7   :  { %v371_v26 = vpack.c.bf16 %v186_v25, %v185_v23  ;;  %v188_v28 = vld [vmem:[%s472_s1 + $0x88] sm:$0xff]  ;;  %v12_v33 = vld [vmem:[%s472_s1 + $0xa0] sm:$0x7]  ;;  %v189_v39 = vld [vmem:[%s472_s1 + $0x90] sm:$0xff] }
   0x8   :  { %354 = vmatpush3.bf16.msra.mxu0 %v353_v11  ;;  %v374_v29 = vpack.c.bf16 %v188_v28, %v187_v27  ;;  %v20_v34 = vrot.slane %v12_v33, %v19_v32  ;;  %v190_v40 = vld [vmem:[%s472_s1 + $0x98] sm:$0xff]  ;;  %v107_v43 = vrot.slane %v12_v33, %v106_v42  ;;  %v194_v49 = vrot.slane %v12_v33, %v193_v48 }
   0x9   :  { %367 = vmatprep.subr.bf16.mxu0 %v382_v0  ;;  %360 = vmatpush3.bf16.msra.mxu1 %v359_v13  ;;  %v377_v41 = vpack.c.bf16 %v190_v40, %v189_v39 }
   0xa   :  { %361 = vmatprep.subr.bf16.mxu1 %v382_v0 }
   0xb   :  { %309 = vmatmul.mubr.msk.f32.vlgmr.msra.gmra.mrb[0].mxu0 %vm21_vm1, %v11_v16 }
   0xc   :  { %346 = vmatprep.mubr.msk.f32.mxu0 %vm383_vm0, %v384_v4  ;;  %369 = vmatpush3.bf16.msra.mxu0 %v368_v24 }
   0xd   :  { %363 = vmatpush3.bf16.msra.mxu1 %v362_v17  ;;  %370 = vmatprep.subr.bf16.mxu0 %v382_v0 }
   0xe   :  { %364 = vmatprep.subr.bf16.mxu1 %v382_v0 }
  0x10   :  { %372 = vmatpush3.bf16.msra.mxu0 %v371_v26 }
  0x11   :  { %366 = vmatpush3.bf16.msra.mxu1 %v365_v20  ;;  %373 = vmatprep.subr.bf16.mxu0 %v382_v0 }
  0x14   :  { %375 = vmatpush3.bf16.msra.mxu0 %v374_v29 }
  0x15   :  { %376 = vmatprep.subr.bf16.mxu0 %v382_v0 }
  0x18   :  { %378 = vmatpush3.bf16.msra.mxu0 %v377_v41 }
  0xde   :  { %v91_v35 = vpop.f32.mrb[0].mxu0 }
  0xdf   :  { %v92_v36 = vadd.f32 %v91_v35, %v20_v34  ;;  %v310_v37 = vpop.f32.mrb[1].mxu0 }
  0xe1   :  { %v95_v38 = vmax.f32 %v92_v36, 0.0 }
  0xe3   :  { %328 = vmatmul.mubr.msk.f32.vlgmr.msra.gmra.mrb[0].mxu1 %vm108_vm2, %v95_v38 }
 0x1b6   :  { %v178_v44 = vpop.f32.mrb[0].mxu1 }
 0x1b7   :  { %v179_v45 = vadd.f32 %v178_v44, %v107_v43  ;;  %v329_v46 = vpop.f32.mrb[1].mxu1 }
 0x1b9   :  { %v182_v47 = vmax.f32 %v179_v45, 0.0 }
 0x1bb   :  { %347 = vmatmul.mubr.msk.f32.vlgmr.msra.gmra.mrb[2].mxu0 %vm108_vm2, %v182_v47 }
 0x28e   :  { %v264_v50 = vpop.f32.mrb[2].mxu0 }
 0x28f   :  { %v265_v51 = vadd.f32 %v264_v50, %v194_v49  ;;  %v348_v52 = vpop.f32.mrb[3].mxu0 }
 0x291   :  { %269 = vst.msk [vmem:[%s474_s2] sm:$0xff] %vm268_vm3, %v265_v51 }

</bundles_post_ra>
